<compile_context>
chip_gen: v7x
topology: tpu7x:2x2x1
jax: 0.10.0
libtpu: 0.0.40
codegen_flags: <defaults>
</compile_context>

<pallas_src>
import functools

import jax
import jax.numpy as jnp
import numpy as np
from jax.experimental import pallas as pl
from jax.experimental.pallas import tpu as pltpu

ALPHA = 0.1015625      # DPU_COMPATIBLE LeakyReLU negative slope
BN_EPS = 1e-5          # PyTorch BatchNorm2d default eps


def _round_up(x, m):
    return (x + m - 1) // m * m


def init_params(key, in_channels, num_classes):
    cmid = 2 * in_channels
    cout = (num_classes + 5) * 3
    k = jax.random.split(key, 7)
    w1 = 0.1 * jax.random.normal(k[0], (3, 3, in_channels, cmid), jnp.float32)  # HWIO
    gamma = 1.0 + 0.1 * jax.random.normal(k[1], (cmid,), jnp.float32)
    beta = 0.1 * jax.random.normal(k[2], (cmid,), jnp.float32)
    rmean = 0.1 * jax.random.normal(k[3], (cmid,), jnp.float32)
    rvar = jnp.abs(jax.random.normal(k[4], (cmid,), jnp.float32)) + 0.5
    w2 = 0.1 * jax.random.normal(k[5], (cmid, cout), jnp.float32)
    b2 = 0.1 * jax.random.normal(k[6], (cout,), jnp.float32)
    return (w1, gamma, beta, rmean, rvar, w2, b2)


def fold_params(params):
    """Hoisted weight prep (run ONCE): BN fold, im2col reshape, bf16 casts."""
    w1, gamma, beta, rmean, rvar, w2, b2 = params
    Cin, Cmid = w1.shape[2], w1.shape[3]
    Cout = w2.shape[1]
    Cin_p = _round_up(Cin, 16)     # bf16 packs 16 rows per vreg
    Cmid_p = _round_up(Cmid, 16)
    Cout_p = _round_up(Cout, 8)    # f32 output sublanes

    inv_std = 1.0 / jnp.sqrt(rvar + BN_EPS)
    scale = gamma * inv_std                                        # (Cmid,)
    shift = beta - rmean * scale
    shift_p = jnp.pad(shift, (0, Cmid_p - Cmid)).reshape(Cmid_p, 1)           # f32

    w1f = w1 * scale[None, None, None, :]                          # (3,3,Cin,Cmid), BN scale folded
    w1t = jnp.transpose(w1f, (3, 0, 1, 2)).reshape(Cmid, 9, Cin)   # (Cmid, tap, Cin)
    w1t = jnp.pad(w1t, ((0, Cmid_p - Cmid), (0, 0), (0, Cin_p - Cin)))
    w1t = w1t.reshape(Cmid_p, 9 * Cin_p).astype(jnp.bfloat16)      # im2col-packed weights

    w2t = jnp.pad(jnp.transpose(w2, (1, 0)),
                  ((0, Cout_p - Cout), (0, Cmid_p - Cmid))).astype(jnp.bfloat16)  # (Cout_p, Cmid_p)
    b2c = jnp.pad(b2, (0, Cout_p - Cout)).reshape(Cout_p, 1)                      # f32
    return (w1t, shift_p, w2t, b2c)


def _make_kernel(starts, cin_p, tile):
    """Kernel closure over static geometry (tap offsets, channel pad, tile size)."""

    def kernel(x_ref, w1_ref, shift_ref, w2_ref, b2_ref, out_ref, col_ref):
        # x_ref     : (1, 1, Cin_p, TILE_X)  bf16  one spatial slab (tile + halo) of one image
        # w1_ref    : (Cmid_p, 9*Cin_p)      bf16  im2col-packed 3x3 weights (BN scale folded)
        # shift_ref : (Cmid_p, 1)            f32   folded BatchNorm shift
        # w2_ref    : (Cout_p, Cmid_p)       bf16  transposed 1x1 conv weights
        # b2_ref    : (Cout_p, 1)            f32   1x1 conv bias
        # out_ref   : (1, Cout_p, TILE)      f32   channel-major output tile (lane = flat spatial)
        # col_ref   : (9*Cin_p, TILE)        bf16  im2col scratch
        xt = x_ref[0, 0]                                            # (Cin_p, TILE_X)
        for i, s in enumerate(starts):                              # 9 static slice-copies
            col_ref[i * cin_p:(i + 1) * cin_p, :] = xt[:, s:s + tile]

        # 3x3 conv == ONE MXU matmul with contraction K = 9*Cin_p.
        h = jnp.dot(w1_ref[...], col_ref[...], preferred_element_type=jnp.float32)
        h = h + shift_ref[...]                                      # BatchNorm (scale folded into w1)
        h = jnp.maximum(h, ALPHA * h)                               # LeakyReLU, f32 on VPU

        o = jnp.dot(w2_ref[...], h.astype(w2_ref.dtype),            # 1x1 conv on MXU
                    preferred_element_type=jnp.float32)
        out_ref[0] = (o + b2_ref[...]).astype(out_ref.dtype)

    return kernel


@functools.partial(jax.jit, static_argnames=("num_classes",))
def standard_scale_prediction(x_nchw, folded, num_classes):
    w1t, shift, w2t, b2c = folded
    B, Cin, H, W = x_nchw.shape
    Cin_p = w1t.shape[1] // 9
    Cmid_p = w1t.shape[0]
    Cout_p = w2t.shape[0]
    Cout = (num_classes + 5) * 3
    Hp, Wp = H + 2, W + 2

    # ---- spatial geometry: lane axis = row-major flattened padded grid ----
    Lo = H * Wp                           # flat output covering rows 1..H of the padded grid
    TILE = 512
    while TILE > 128 and (Lo + TILE - 1) // TILE < 2:
        TILE //= 2                        # >=2 spatial tiles whenever Lo > 128 (v7x dual-TC)
    Lo_pad = _round_up(Lo, TILE)          # multiple of TILE (and of 128) -> lane-dense stores
    n_tiles = Lo_pad // TILE
    HALO = 2 * Wp + 2                     # largest tap offset of the 3x3 SAME conv
    HALO_pad = _round_up(HALO, 128)
    TILE_X = TILE + HALO_pad              # slab width (lane-dense, covers tile + halo)
    L_pad = Lo_pad + HALO_pad             # padded flat length (multiple of 128)

    starts = tuple(dy * Wp + dx for dy in range(3) for dx in range(3))

    # ---- input glue: cast to bf16 FIRST, then pad/flatten/slab (fused by XLA under jit) ----
    x_b = x_nchw.astype(jnp.bfloat16)
    x_p = jnp.pad(x_b, ((0, 0), (0, Cin_p - Cin), (1, 1), (1, 1)))
    x_f = x_p.reshape(B, Cin_p, Hp * Wp)
    x_f = jnp.pad(x_f, ((0, 0), (0, 0), (1, L_pad - Hp * Wp - 1)))   # (B, Cin_p, L_pad)
    # Overlapping slabs so every in-kernel tap slice is static and in-bounds.
    x_slabs = jnp.stack(
        [x_f[:, :, t * TILE: t * TILE + TILE_X] for t in range(n_tiles)],
        axis=1)                                                       # (B, n_tiles, Cin_p, TILE_X)

    kernel = _make_kernel(starts, Cin_p, TILE)

    grid_spec = pltpu.PrefetchScalarGridSpec(
        num_scalar_prefetch=0,
        grid=(B, n_tiles),
        in_specs=[
            pl.BlockSpec((1, 1, Cin_p, TILE_X), lambda b, t: (b, t, 0, 0)),
            pl.BlockSpec((Cmid_p, 9 * Cin_p), lambda b, t: (0, 0)),
            pl.BlockSpec((Cmid_p, 1), lambda b, t: (0, 0)),
            pl.BlockSpec((Cout_p, Cmid_p), lambda b, t: (0, 0)),
            pl.BlockSpec((Cout_p, 1), lambda b, t: (0, 0)),
        ],
        out_specs=pl.BlockSpec((1, Cout_p, TILE), lambda b, t: (b, 0, t)),
        scratch_shapes=[pltpu.VMEM((9 * Cin_p, TILE), jnp.bfloat16)],
    )

    # VMEM budget from the actual blocks; tiles are sized to leave headroom on
    # v7x (64 MiB physical) while keeping double-buffering on all generations.
    bytes_blocks = (Cin_p * TILE_X * 2 + Cmid_p * 9 * Cin_p * 2 + Cmid_p * 4
                    + Cout_p * Cmid_p * 2 + Cout_p * 4 + Cout_p * TILE * 4)
    bytes_scratch = 9 * Cin_p * TILE * 2 + Cmid_p * TILE * 4
    vmem_limit = int(min(64 * 1024 * 1024,
                         max(32 * 1024 * 1024, 4 * (2 * bytes_blocks + bytes_scratch))))

    out = pl.pallas_call(
        kernel,
        out_shape=jax.ShapeDtypeStruct((B, Cout_p, Lo_pad), jnp.float32),
        grid_spec=grid_spec,
        compiler_params=pltpu.CompilerParams(
            dimension_semantics=("parallel", "parallel"),
            vmem_limit_bytes=vmem_limit,
        ),
    )(x_slabs, w1t, shift, w2t, b2c)

    # ---- output glue: drop padded channels + width-halo columns; already NCHW ----
    out_nchw = out[:, :Cout, :Lo].reshape(B, Cout, H, Wp)[:, :, :, 1:W + 1]
    # exact PyTorch .view on contiguous NCHW memory
    return out_nchw.reshape(B, 3, H, W, num_classes + 5)


def reference(x_nchw, params, num_classes):
    """Pure-JAX f32 reference (lax.conv) to validate the kernel numerics."""
    w1, gamma, beta, rmean, rvar, w2, b2 = params
    B, _, H, W = x_nchw.shape
    x_nhwc = jnp.transpose(x_nchw, (0, 2, 3, 1))
    h = jax.lax.conv_general_dilated(
        x_nhwc, w1, window_strides=(1, 1), padding="SAME",
        dimension_numbers=("NHWC", "HWIO", "NHWC"))
    h = (h - rmean) / jnp.sqrt(rvar + BN_EPS) * gamma + beta
    h = jnp.where(h > 0, h, ALPHA * h)
    o = jnp.einsum("bhwc,cd->bhwd", h, w2) + b2
    o_nchw = jnp.transpose(o, (0, 3, 1, 2))
    return o_nchw.reshape(B, 3, H, W, num_classes + 5)


if __name__ == "__main__":
    B, Cin, H, W = 2, 4, 16, 16
    num_classes = 3

    key = jax.random.PRNGKey(0)
    kx, kp = jax.random.split(key)
    x = jax.random.normal(kx, (B, Cin, H, W), jnp.float32)
    params = init_params(kp, Cin, num_classes)

    folded = jax.block_until_ready(fold_params(params))   # weight prep hoisted, done once

    out = standard_scale_prediction(x, folded, num_classes)
    out = jax.block_until_ready(out)

    assert out.shape == (B, 3, H, W, num_classes + 5), out.shape

    ref = jax.block_until_ready(reference(x, params, num_classes))
    np.testing.assert_allclose(np.asarray(out), np.asarray(ref), rtol=2e-2, atol=2e-2)

    print("KERNEL_OK")
</pallas_src>

<mosaic_0001>
module attributes {stable_mosaic.version = 11 : i64} {
  func.func @kernel(%arg0: i32, %arg1: i32, %arg2: memref<1x1x16x384xbf16, #tpu.memory_space<vmem>>, %arg3: memref<16x144xbf16, #tpu.memory_space<vmem>>, %arg4: memref<16x1xf32, #tpu.memory_space<vmem>>, %arg5: memref<24x16xbf16, #tpu.memory_space<vmem>>, %arg6: memref<24x1xf32, #tpu.memory_space<vmem>>, %arg7: memref<1x24x256xf32, #tpu.memory_space<vmem>>, %arg8: memref<144x256xbf16, #tpu.memory_space<vmem>>) attributes {dimension_semantics = [#tpu.dimension_semantics<parallel>, #tpu.dimension_semantics<parallel>], iteration_bounds = array<i64: 2, 2>, scalar_prefetch = 0 : i64, scratch_operands = 1 : i64, tpu.core_type = #tpu.core_type<tc>, window_params = [{transform_indices = @transform_0, window_bounds = array<i64: 1, 1, 16, 384>}, {pipeline_mode = #tpu.pipeline_mode<synchronous>, transform_indices = @transform_1, window_bounds = array<i64: 16, 144>}, {pipeline_mode = #tpu.pipeline_mode<synchronous>, transform_indices = @transform_2, window_bounds = array<i64: 16, 1>}, {pipeline_mode = #tpu.pipeline_mode<synchronous>, transform_indices = @transform_3, window_bounds = array<i64: 24, 16>}, {pipeline_mode = #tpu.pipeline_mode<synchronous>, transform_indices = @transform_4, window_bounds = array<i64: 24, 1>}, {transform_indices = @transform_5, window_bounds = array<i64: 1, 24, 256>}]} {
    %c0 = arith.constant 0 : index
    %c0_0 = arith.constant 0 : index
    %c0_1 = arith.constant 0 : index
    %c0_2 = arith.constant 0 : index
    %0 = vector.load %arg2[%c0, %c0_0, %c0_1, %c0_2] : memref<1x1x16x384xbf16, #tpu.memory_space<vmem>>, vector<1x1x16x384xbf16>
    %1 = vector.shape_cast %0 : vector<1x1x16x384xbf16> to vector<16x384xbf16>
    %2 = vector.extract_strided_slice %1 {offsets = [0, 0], sizes = [16, 256], strides = [1, 1]} : vector<16x384xbf16> to vector<16x256xbf16>
    %c0_3 = arith.constant 0 : index
    %c0_4 = arith.constant 0 : index
    %3 = vector.load %arg8[%c0_3, %c0_4] : memref<144x256xbf16, #tpu.memory_space<vmem>>, vector<16x256xbf16>
    tpu.vector_store %arg8[%c0_3, %c0_4], %2 {strides = array<i32>} : memref<144x256xbf16, #tpu.memory_space<vmem>>, vector<16x256xbf16>,
    %4 = vector.extract_strided_slice %1 {offsets = [0, 1], sizes = [16, 256], strides = [1, 1]} : vector<16x384xbf16> to vector<16x256xbf16>
    %c16 = arith.constant 16 : index
    %c0_5 = arith.constant 0 : index
    %5 = vector.load %arg8[%c16, %c0_5] : memref<144x256xbf16, #tpu.memory_space<vmem>>, vector<16x256xbf16>
    tpu.vector_store %arg8[%c16, %c0_5], %4 {strides = array<i32>} : memref<144x256xbf16, #tpu.memory_space<vmem>>, vector<16x256xbf16>,
    %6 = vector.extract_strided_slice %1 {offsets = [0, 2], sizes = [16, 256], strides = [1, 1]} : vector<16x384xbf16> to vector<16x256xbf16>
    %c32 = arith.constant 32 : index
    %c0_6 = arith.constant 0 : index
    %7 = vector.load %arg8[%c32, %c0_6] : memref<144x256xbf16, #tpu.memory_space<vmem>>, vector<16x256xbf16>
    tpu.vector_store %arg8[%c32, %c0_6], %6 {strides = array<i32>} : memref<144x256xbf16, #tpu.memory_space<vmem>>, vector<16x256xbf16>,
    %8 = vector.extract_strided_slice %1 {offsets = [0, 18], sizes = [16, 256], strides = [1, 1]} : vector<16x384xbf16> to vector<16x256xbf16>
    %c48 = arith.constant 48 : index
    %c0_7 = arith.constant 0 : index
    %9 = vector.load %arg8[%c48, %c0_7] : memref<144x256xbf16, #tpu.memory_space<vmem>>, vector<16x256xbf16>
    tpu.vector_store %arg8[%c48, %c0_7], %8 {strides = array<i32>} : memref<144x256xbf16, #tpu.memory_space<vmem>>, vector<16x256xbf16>,
    %10 = vector.extract_strided_slice %1 {offsets = [0, 19], sizes = [16, 256], strides = [1, 1]} : vector<16x384xbf16> to vector<16x256xbf16>
    %c64 = arith.constant 64 : index
    %c0_8 = arith.constant 0 : index
    %11 = vector.load %arg8[%c64, %c0_8] : memref<144x256xbf16, #tpu.memory_space<vmem>>, vector<16x256xbf16>
    tpu.vector_store %arg8[%c64, %c0_8], %10 {strides = array<i32>} : memref<144x256xbf16, #tpu.memory_space<vmem>>, vector<16x256xbf16>,
    %12 = vector.extract_strided_slice %1 {offsets = [0, 20], sizes = [16, 256], strides = [1, 1]} : vector<16x384xbf16> to vector<16x256xbf16>
    %c80 = arith.constant 80 : index
    %c0_9 = arith.constant 0 : index
    %13 = vector.load %arg8[%c80, %c0_9] : memref<144x256xbf16, #tpu.memory_space<vmem>>, vector<16x256xbf16>
    tpu.vector_store %arg8[%c80, %c0_9], %12 {strides = array<i32>} : memref<144x256xbf16, #tpu.memory_space<vmem>>, vector<16x256xbf16>,
    %14 = vector.extract_strided_slice %1 {offsets = [0, 36], sizes = [16, 256], strides = [1, 1]} : vector<16x384xbf16> to vector<16x256xbf16>
    %c96 = arith.constant 96 : index
    %c0_10 = arith.constant 0 : index
    %15 = vector.load %arg8[%c96, %c0_10] : memref<144x256xbf16, #tpu.memory_space<vmem>>, vector<16x256xbf16>
    tpu.vector_store %arg8[%c96, %c0_10], %14 {strides = array<i32>} : memref<144x256xbf16, #tpu.memory_space<vmem>>, vector<16x256xbf16>,
    %16 = vector.extract_strided_slice %1 {offsets = [0, 37], sizes = [16, 256], strides = [1, 1]} : vector<16x384xbf16> to vector<16x256xbf16>
    %c112 = arith.constant 112 : index
    %c0_11 = arith.constant 0 : index
    %17 = vector.load %arg8[%c112, %c0_11] : memref<144x256xbf16, #tpu.memory_space<vmem>>, vector<16x256xbf16>
    tpu.vector_store %arg8[%c112, %c0_11], %16 {strides = array<i32>} : memref<144x256xbf16, #tpu.memory_space<vmem>>, vector<16x256xbf16>,
    %18 = vector.extract_strided_slice %1 {offsets = [0, 38], sizes = [16, 256], strides = [1, 1]} : vector<16x384xbf16> to vector<16x256xbf16>
    %c128 = arith.constant 128 : index
    %c0_12 = arith.constant 0 : index
    %19 = vector.load %arg8[%c128, %c0_12] : memref<144x256xbf16, #tpu.memory_space<vmem>>, vector<16x256xbf16>
    tpu.vector_store %arg8[%c128, %c0_12], %18 {strides = array<i32>} : memref<144x256xbf16, #tpu.memory_space<vmem>>, vector<16x256xbf16>,
    %c0_13 = arith.constant 0 : index
    %c0_14 = arith.constant 0 : index
    %20 = vector.load %arg3[%c0_13, %c0_14] : memref<16x144xbf16, #tpu.memory_space<vmem>>, vector<16x144xbf16>
    %c0_15 = arith.constant 0 : index
    %c0_16 = arith.constant 0 : index
    %21 = vector.load %arg8[%c0_15, %c0_16] : memref<144x256xbf16, #tpu.memory_space<vmem>>, vector<144x256xbf16>
    %cst = arith.constant dense<0.000000e+00> : vector<16x256xf32>
    %22 = tpu.matmul %20, %21, %cst {dimension_numbers = #tpu.dot_dimension_numbers<[1], [0], [0], [1], [0, 0, 1, 1], [], []>} : vector<16x144xbf16>, vector<144x256xbf16>, vector<16x256xf32> -> vector<16x256xf32>
    %c0_17 = arith.constant 0 : index
    %c0_18 = arith.constant 0 : index
    %23 = vector.load %arg4[%c0_17, %c0_18] : memref<16x1xf32, #tpu.memory_space<vmem>>, vector<16x1xf32>
    %24 = vector.broadcast %23 : vector<16x1xf32> to vector<16x256xf32>
    %25 = arith.addf %22, %24 : vector<16x256xf32>
    %cst_19 = arith.constant 0.1015625 : f32
    %26 = vector.broadcast %cst_19 : f32 to vector<16x256xf32>
    %27 = arith.mulf %26, %25 : vector<16x256xf32>
    %28 = arith.maximumf %25, %27 : vector<16x256xf32>
    %c0_20 = arith.constant 0 : index
    %c0_21 = arith.constant 0 : index
    %29 = vector.load %arg5[%c0_20, %c0_21] : memref<24x16xbf16, #tpu.memory_space<vmem>>, vector<24x16xbf16>
    %30 = arith.truncf %28 : vector<16x256xf32> to vector<16x256xbf16>
    %cst_22 = arith.constant dense<0.000000e+00> : vector<24x256xf32>
    %31 = tpu.matmul %29, %30, %cst_22 {dimension_numbers = #tpu.dot_dimension_numbers<[1], [0], [0], [1], [0, 0, 1, 1], [], []>} : vector<24x16xbf16>, vector<16x256xbf16>, vector<24x256xf32> -> vector<24x256xf32>
    %c0_23 = arith.constant 0 : index
    %c0_24 = arith.constant 0 : index
    %32 = vector.load %arg6[%c0_23, %c0_24] : memref<24x1xf32, #tpu.memory_space<vmem>>, vector<24x1xf32>
    %33 = vector.broadcast %32 : vector<24x1xf32> to vector<24x256xf32>
    %34 = arith.addf %31, %33 : vector<24x256xf32>
    %c0_25 = arith.constant 0 : index
    %c0_26 = arith.constant 0 : index
    %c0_27 = arith.constant 0 : index
    %35 = vector.load %arg7[%c0_25, %c0_26, %c0_27] : memref<1x24x256xf32, #tpu.memory_space<vmem>>, vector<1x24x256xf32>
    %36 = vector.shape_cast %35 : vector<1x24x256xf32> to vector<24x256xf32>
    %37 = vector.shape_cast %34 : vector<24x256xf32> to vector<1x24x256xf32>
    tpu.vector_store %arg7[%c0_25, %c0_26, %c0_27], %37 {strides = array<i32>} : memref<1x24x256xf32, #tpu.memory_space<vmem>>, vector<1x24x256xf32>,
    return
  }
  func.func @transform_0(%arg0: i32, %arg1: i32) -> (i32, i32, i32, i32) {
    %c0_i32 = arith.constant 0 : i32
    %c0_i32_0 = arith.constant 0 : i32
    %c0_i32_1 = arith.constant 0 : i32
    return %arg0, %arg1, %c0_i32, %c0_i32_0 : i32, i32, i32, i32
  }
  func.func @transform_1(%arg0: i32, %arg1: i32) -> (i32, i32) {
    %c0_i32 = arith.constant 0 : i32
    %c0_i32_0 = arith.constant 0 : i32
    %c0_i32_1 = arith.constant 0 : i32
    return %c0_i32, %c0_i32_0 : i32, i32
  }
  func.func @transform_2(%arg0: i32, %arg1: i32) -> (i32, i32) {
    %c0_i32 = arith.constant 0 : i32
    %c0_i32_0 = arith.constant 0 : i32
    %c0_i32_1 = arith.constant 0 : i32
    return %c0_i32, %c0_i32_0 : i32, i32
  }
  func.func @transform_3(%arg0: i32, %arg1: i32) -> (i32, i32) {
    %c0_i32 = arith.constant 0 : i32
    %c0_i32_0 = arith.constant 0 : i32
    %c0_i32_1 = arith.constant 0 : i32
    return %c0_i32, %c0_i32_0 : i32, i32
  }
  func.func @transform_4(%arg0: i32, %arg1: i32) -> (i32, i32) {
    %c0_i32 = arith.constant 0 : i32
    %c0_i32_0 = arith.constant 0 : i32
    %c0_i32_1 = arith.constant 0 : i32
    return %c0_i32, %c0_i32_0 : i32, i32
  }
  func.func @transform_5(%arg0: i32, %arg1: i32) -> (i32, i32, i32) {
    %c0_i32 = arith.constant 0 : i32
    %c0_i32_0 = arith.constant 0 : i32
    return %arg0, %c0_i32, %arg1 : i32, i32, i32
  }
}

</mosaic_0001>

<bundles_post_ra>
// kernel: standard_scale_prediction.1
= control target key start
LH: loop header
LB: loop body
LE: loop exit
PB: predicated region body
PF: predicated region fallthrough
CT: control target
= control target key end

     0   :  { %s872_s18 = smov 0   ;;  %s874_s19 = smov 0   ;;  %s1001_s0 = inlined_call_operand.vmem [shape: bf16[2,2,16,384], index: 0, kind: input, shape index: {}]   ;;  %s1002_s1 = inlined_call_operand.vmem [shape: bf16[16,144], index: 1, kind: input, shape index: {}]   ;;  %s1003_s2 = inlined_call_operand.vmem [shape: f32[16,1], index: 2, kind: input, shape index: {}]   ;;  %s1004_s3 = inlined_call_operand.vmem [shape: bf16[24,16], index: 3, kind: input, shape index: {}]   ;;  %s1005_s4 = inlined_call_operand.vmem [shape: f32[24,1], index: 4, kind: input, shape index: {}]   ;;  %s1006_s5 = inlined_call_operand.vmem [shape: f32[2,24,512], index: 5, kind: output, shape index: {}]  }
   0x1   :  { %s876_s20 = smov 0   ;;  %s878_s21 = smov 0  }
   0x2   :  { %s880_s22 = smov 0   ;;  %s882_s23 = smov 0  }
   0x3   :  { %s884_s24 = smov 0  }
   0x4 LB: > { %s24_s25 = sadd.s32 1, %s823_s22  ;;  %s27_s26 = sadd.s32 1, %s827_s23  ;;  %s831_s24 = sphi %s884_s24, %s15_s24   ;;  %s827_s23 = sphi %s882_s23, %s1013_s23   ;;  %s823_s22 = sphi %s880_s22, %s1012_s22   ;;  %s819_s21 = sphi %s878_s21, %s1011_s21   ;;  %s815_s20 = sphi %s876_s20, %s1010_s20   ;;  %s811_s19 = sphi %s874_s19, %s1009_s19   ;;  %s807_s18 = sphi %s872_s18, %s1008_s18  }
   0x5   : > { %p25_p0 = scmp.ge.s32.totalorder %s24_s25, 2  ;;  %s677_s27 = sadd.s32 4294967295, %s831_s24  }
   0x6   : > { %p158_p1 = scmp.ne.s32.totalorder %s811_s19, %s807_s18  ;;  %p159_p2 = scmp.eq.s32.totalorder %s677_s27, 3 }
   0x7   : > { %s1015_s25 = smov (%p25_p0, %s24_s25), 0  ;;  %s1017_s26 = smov (!%p25_p0, %s27_s26), %s827_s23 }
   0x8   : > { %s144_s28 = ssub.s32 %s823_s22, %s1015_s25  ;;  %p29_p3 = scmp.ge.s32.totalorder %s1017_s26, 2 }
   0x9   : > { %p681_p4 = scmp.ge.s32.totalorder %s831_s24, 1  ;;  %p918_p5 = por %p159_p2, %p158_p1 }
   0xa   : > { %p207_p6 = scmp.lt.s32.totalorder %s831_s24, 5  ;;  %s1019_s26 = smov (%p29_p3, %s1017_s26), 0 }
   0xb   : > { %s143_s30 = ssub.s32 %s827_s23, %s1019_s26  ;;  %s148_s7 = sadd.s32 1, %s811_s19 }
   0xc   : > { %p208_p7 = pnand %p681_p4, %p207_p6  ;;  %s145_s6 = sor.u32 %s144_s28, %s143_s30 }
   0xd   : > { %p146_p8 = scmp.eq.s32.totalorder %s145_s6, 0  ;;  %p238_p9 = scmp.lt.s32.totalorder (!%p208_p7), %s819_s21, 1  ;;  %v774_v3 = vld [vmem:[%s1002_s1 + $0x4] ss:$8 sps:$4 sm:$0xff] (!%p208_p7)   ;;  %vm415_vm0 = vcmask (!%p208_p7), 130048   ;;  %v840_v4 = vmov (!%p208_p7), 0  }
   0xe   : > { %211 = sbr.rel (%p208_p7) target bundleno = 653 (0x28d), region = 40  ;;  %p240_p10 = scmp.lt.s32.totalorder (!%p208_p7), %s815_s20, 1  ;;  %688 = vmatprep.mubr.msk.bf16.mxu0 (!%p208_p7), %vm415_vm0, %v774_v3  ;;  %766 = vset.pattern.permute.xlu0 (!%p208_p7), %v840_v4  ;;  %v394_v5 = vld [vmem:[%s1003_s2] sm:$0xff] (!%p208_p7)  ;;  %v395_v6 = vld [vmem:[%s1003_s2 + $0x8] sm:$0xff] (!%p208_p7)  ;;  %v477_v9 = vld [vmem:[%s1005_s4 + $0x10] sm:$0xff] (!%p208_p7)  ;;  %vm276_vm1 = vcmask (!%p208_p7), 1039360  }
   0xf   : > { %s929_s8 = scalar_select %p146_p8, %s811_s19, %s148_s7  }
  0x10   : > { %s833_s27 = smov (!%p208_p7), 127   ;;  %s834_s28 = smov (!%p208_p7), 126   ;;  %767 = vset.pattern.permute.xlu1 (!%p208_p7), %v840_v4  ;;  %539 = vmatprep.mubr.bf16.mxu1 (!%p208_p7), %v840_v4  ;;  %v476_v7 = vld [vmem:[%s1005_s4 + $0x8] sm:$0xff] (!%p208_p7)  ;;  %v475_v8 = vld [vmem:[%s1005_s4] sm:$0xff] (!%p208_p7)  ;;  %vm289_vm2 = vcmask (!%p208_p7), 1031168   ;;  %vm302_vm3 = vcmask (!%p208_p7), 900096  }
  0x11   : > { %s835_s30 = smov (!%p208_p7), 110   ;;  %s836_s6 = smov (!%p208_p7), 109   ;;  %vm315_vm4 = vcmask (!%p208_p7), 891904   ;;  %vm328_vm5 = vcmask (!%p208_p7), 883712   ;;  %vm341_vm6 = vcmask (!%p208_p7), 752640   ;;  %vm354_vm7 = vcmask (!%p208_p7), 744448  }
  0x12   : > { %s837_s7 = smov (!%p208_p7), 108   ;;  %vm367_vm8 = vcmask (!%p208_p7), 736256   ;;  %v772_v50 = vld [vmem:[%s1002_s1] ss:$8 sps:$4 sm:$0xff] (!%p208_p7)   ;;  %s235_s16 = sand.u32 (!%p208_p7), 1, %s807_s18  }
  0x15   : > { %s239_s9 = scalar_select %p238_p9, %s819_s21, 1 }
  0x16   : > { %s241_s10 = scalar_select %p240_p10, %s815_s20, 1 }
  0x17   : > { %s699_s11 = smul.u32 12, %s239_s9  ;;  %s838_s9 = smov 92  }
  0x18   : > { %s698_s12 = smul.u32 6, %s241_s10  ;;  %s693_s18 = sshll.u32 (%p918_p5), %s815_s20, 1 }
  0x1a   : > { %s244_s13 = sadd.s32 %s699_s11, %s698_s12  ;;  %s839_s12 = smov 91  }
  0x1b   : > { %s682_s14 = sshll.u32 %s244_s13, 2  ;;  %s841_s13 = smov 90  }
  0x1c   : > { %s246_s17 = scalar_lea.vmem %s1001_s0, %s682_s14 }
  0x1d   : > { %v768_v0 = vld [vmem:[%s246_s17 + $0x4] ss:$12 sps:$4 sm:$0xff]   ;;  %v770_v1 = vld [vmem:[%s246_s17] ss:$12 sps:$4 sm:$0xff]   ;;  %v771_v2 = vld [vmem:[%s246_s17 + $0x8] ss:$12 sps:$4 sm:$0xff]  }
  0x1e   : > { %272 = vrot.lane.b32.xlu0 %v768_v0, %s833_s27  ;;  %419 = vmatprep.subr.bf16.mxu0 %v768_v0  ;;  %s697_s17 = smul.u32 48, %s235_s16 }
  0x1f   : > { %270 = vrot.lane.b32.xlu1 %v770_v1, %s833_s27  ;;  %420 = vmatpush1.bf16.msra.mxu0 %v770_v1 }
  0x22   : > { %274 = vrot.lane.b32.xlu0 %v771_v2, %s833_s27  ;;  %s237_s27 = scalar_lea.vmem [#allocation3], %s697_s17 }
  0x23   : > { %285 = vrot.lane.b32.xlu1 %v768_v0, %s834_s28 }
  0x26   : > { %287 = vrot.lane.b32.xlu0 %v771_v2, %s834_s28 }
  0x27   : > { %283 = vrot.lane.b32.xlu1 %v770_v1, %s834_s28  ;;  %s700_s28 = smul.u32 (%p918_p5), 12, %s819_s21 }
  0x2a   : > { %298 = vrot.lane.b32.xlu0 %v768_v0, %s835_s30 }
  0x2b   : > { %300 = vrot.lane.b32.xlu1 %v771_v2, %s835_s30 }
  0x2e   : > { %296 = vrot.lane.b32.xlu0 %v770_v1, %s835_s30  ;;  %s573_s30 = sadd.s32 (%p918_p5), %s700_s28, %s693_s18 }
  0x2f   : > { %311 = vrot.lane.b32.xlu1 %v768_v0, %s836_s6 }
  0x32   : > { %313 = vrot.lane.b32.xlu0 %v771_v2, %s836_s6 }
  0x33   : > { %309 = vrot.lane.b32.xlu1 %v770_v1, %s836_s6  ;;  %s694_s6 = sshll.u32 (%p918_p5), %s573_s30, 3 }
  0x34   : > { %s575_s10 = scalar_lea.vmem (%p918_p5), %s1006_s5, %s694_s6 }
  0x36   : > { %324 = vrot.lane.b32.xlu0 %v768_v0, %s837_s7 }
  0x37   : > { %326 = vrot.lane.b32.xlu1 %v771_v2, %s837_s7 }
  0x3a   : > { %322 = vrot.lane.b32.xlu0 %v770_v1, %s837_s7 }
  0x3b   : > { %337 = vrot.lane.b32.xlu1 %v768_v0, %s838_s9 }
  0x3e   : > { %339 = vrot.lane.b32.xlu0 %v771_v2, %s838_s9 }
  0x3f   : > { %335 = vrot.lane.b32.xlu1 %v770_v1, %s838_s9 }
  0x42   : > { %350 = vrot.lane.b32.xlu0 %v768_v0, %s839_s12 }
  0x43   : > { %352 = vrot.lane.b32.xlu1 %v771_v2, %s839_s12 }
  0x46   : > { %348 = vrot.lane.b32.xlu0 %v770_v1, %s839_s12 }
  0x47   : > { %363 = vrot.lane.b32.xlu1 %v768_v0, %s841_s13 }
  0x4a   : > { %365 = vrot.lane.b32.xlu0 %v771_v2, %s841_s13 }
  0x4b   : > { %361 = vrot.lane.b32.xlu1 %v770_v1, %s841_s13 }
  0x4e   : > { %398 = vperm.xlu0 %766, %v394_v5  }
  0x4f   : > { %403 = vperm.xlu1 %767, %v395_v6  }
  0x52   : > { %485 = vperm.xlu0 %766, %v476_v7  }
  0x53   : > { %480 = vperm.xlu1 %767, %v475_v8   ;;  %v775_v8 = vld [vmem:[%s1004_s3] sm:$0xff]  }
  0x57   : > { %490 = vperm.xlu1 %767, %v477_v9   ;;  %v776_v9 = vld [vmem:[%s1004_s3 + $0x8] ss:$0 sps:$4 sm:$0xff]  }
  0x90   : > { %v273_v10 = vpop.permute.xlu0 %272 }
  0x91   : > { %v271_v11 = vpop.permute.xlu1 %270 }
  0x92   : > { %v277_v15 = vsel %vm276_vm1, %v271_v11, %v273_v10 }
  0x94   : > { %v275_v12 = vpop.permute.xlu0 %274 }
  0x95   : > { %v286_v13 = vpop.permute.xlu1 %285  ;;  %v278_v14 = vsel %vm276_vm1, %v273_v10, %v275_v12 }
  0x96   : > { %421 = vmatprep.subr.bf16.mxu0 %v278_v14 }
  0x97   : > { %422 = vmatpush1.bf16.msra.mxu0 %v277_v15 }
  0x98   : > { %v288_v16 = vpop.permute.xlu0 %287 }
  0x99   : > { %v284_v17 = vpop.permute.xlu1 %283  ;;  %v291_v18 = vsel %vm289_vm2, %v286_v13, %v288_v16 }
  0x9a   : > { %423 = vmatprep.subr.bf16.mxu0 %v291_v18  ;;  %v290_v19 = vsel %vm289_vm2, %v284_v17, %v286_v13 }
  0x9b   : > { %424 = vmatpush1.bf16.msra.mxu0 %v290_v19 }
  0x9c   : > { %v299_v20 = vpop.permute.xlu0 %298 }
  0x9d   : > { %v301_v21 = vpop.permute.xlu1 %300 }
  0x9e   : > { %v304_v22 = vsel %vm302_vm3, %v299_v20, %v301_v21 }
  0x9f   : > { %425 = vmatprep.subr.bf16.mxu0 %v304_v22 }
  0xa0   : > { %v297_v23 = vpop.permute.xlu0 %296 }
  0xa1   : > { %v312_v24 = vpop.permute.xlu1 %311  ;;  %v303_v25 = vsel %vm302_vm3, %v297_v23, %v299_v20 }
  0xa2   : > { %426 = vmatpush1.bf16.msra.mxu0 %v303_v25 }
  0xa4   : > { %v314_v26 = vpop.permute.xlu0 %313 }
  0xa5   : > { %v310_v27 = vpop.permute.xlu1 %309  ;;  %v317_v28 = vsel %vm315_vm4, %v312_v24, %v314_v26 }
  0xa6   : > { %427 = vmatprep.subr.bf16.mxu0 %v317_v28  ;;  %v316_v29 = vsel %vm315_vm4, %v310_v27, %v312_v24 }
  0xa7   : > { %428 = vmatpush1.bf16.msra.mxu0 %v316_v29 }
  0xa8   : > { %v325_v30 = vpop.permute.xlu0 %324 }
  0xa9   : > { %v327_v31 = vpop.permute.xlu1 %326 }
  0xaa   : > { %v330_v32 = vsel %vm328_vm5, %v325_v30, %v327_v31 }
  0xab   : > { %429 = vmatprep.subr.bf16.mxu0 %v330_v32 }
  0xac   : > { %v323_v33 = vpop.permute.xlu0 %322 }
  0xad   : > { %v338_v34 = vpop.permute.xlu1 %337  ;;  %v329_v35 = vsel %vm328_vm5, %v323_v33, %v325_v30 }
  0xae   : > { %430 = vmatpush1.bf16.msra.mxu0 %v329_v35 }
  0xb0   : > { %v340_v36 = vpop.permute.xlu0 %339 }
  0xb1   : > { %v336_v37 = vpop.permute.xlu1 %335  ;;  %v343_v38 = vsel %vm341_vm6, %v338_v34, %v340_v36 }
  0xb2   : > { %431 = vmatprep.subr.bf16.mxu0 %v343_v38  ;;  %v342_v39 = vsel %vm341_vm6, %v336_v37, %v338_v34 }
  0xb3   : > { %432 = vmatpush1.bf16.msra.mxu0 %v342_v39 }
  0xb4   : > { %v351_v40 = vpop.permute.xlu0 %350 }
  0xb5   : > { %v353_v41 = vpop.permute.xlu1 %352 }
  0xb6   : > { %v356_v42 = vsel %vm354_vm7, %v351_v40, %v353_v41 }
  0xb7   : > { %433 = vmatprep.subr.bf16.mxu0 %v356_v42 }
  0xb8   : > { %v349_v43 = vpop.permute.xlu0 %348 }
  0xb9   : > { %v364_v44 = vpop.permute.xlu1 %363  ;;  %v355_v45 = vsel %vm354_vm7, %v349_v43, %v351_v40 }
  0xba   : > { %434 = vmatpush1.bf16.msra.mxu0 %v355_v45 }
  0xbc   : > { %v366_v46 = vpop.permute.xlu0 %365 }
  0xbd   : > { %v362_v47 = vpop.permute.xlu1 %361  ;;  %v369_v48 = vsel %vm367_vm8, %v364_v44, %v366_v46 }
  0xbe   : > { %435 = vmatprep.subr.bf16.mxu0 %v369_v48  ;;  %v368_v49 = vsel %vm367_vm8, %v362_v47, %v364_v44 }
  0xbf   : > { %436 = vmatpush1.bf16.msra.mxu0 %v368_v49 }
  0xc2   : > { %452 = vmatmul.mubr.bf16.vlgmr.msra.gmra.mrb[0].mxu0 %v772_v50 }
  0xcd   : > { %v399_v51 = vpop.permute.xlu0 %398 }
  0xce   : > { %v404_v55 = vpop.permute.xlu1 %403 }
  0xd1   : > { %v486_v14 = vpop.permute.xlu0 %485 }
  0xd2   : > { %v481_v10 = vpop.permute.xlu1 %480 }
  0xd6   : > { %v491_v19 = vpop.permute.xlu1 %490 }
 0x195   : > { %v453_v52 = vpop.f32.mrb[0].mxu0 }
 0x196   : > { %v454_v53 = vadd.f32 %v453_v52, %v399_v51  ;;  %v455_v54 = vpop.f32.mrb[1].mxu0 }
 0x197   : > { %v456_v56 = vadd.f32 %v455_v54, %v399_v51  ;;  %v457_v57 = vpop.f32.mrb[2].mxu0 }
 0x198   : > { %v462_v58 = vmul.f32 0.1015625, %v454_v53  ;;  %v458_v59 = vadd.f32 %v457_v57, %v404_v55  ;;  %v459_v60 = vpop.f32.mrb[3].mxu0 }
 0x199   : > { %v463_v61 = vmul.f32 0.1015625, %v456_v56  ;;  %v460_v62 = vadd.f32 %v459_v60, %v404_v55 }
 0x19a   : > { %v464_v63 = vmul.f32 0.1015625, %v458_v59  ;;  %v466_v1 = vmax.f32 %v454_v53, %v462_v58 }
 0x19b   : > { %v465_v0 = vmul.f32 0.1015625, %v460_v62  ;;  %v467_v3 = vmax.f32 %v456_v56, %v463_v61 }
 0x19c   : > { %v468_v2 = vmax.f32 %v458_v59, %v464_v63 }
 0x19d   : > { %v469_v5 = vmax.f32 %v460_v62, %v465_v0 }
 0x19e   : > { %v473_v6 = vpack.c.bf16 %v468_v2, %v466_v1 }
 0x19f   : > { %v474_v7 = vpack.c.bf16 %v469_v5, %v467_v3 }
 0x1a1   : > { %507 = vmatprep.subr.bf16.mxu1 %v474_v7 }
 0x1a2   : > { %508 = vmatpush1.bf16.msra.mxu1 %v473_v6 }
 0x1a5   : > { %691 = vmatmul.mubr.msk.bf16.vlgmr.msra.gmra.mrb[0].mxu1 %vm415_vm0, %v775_v8 }
 0x1a6   : > { %549 = vmatprep.mubr.bf16.mxu1 %v840_v4 }
 0x1ad   : > { %692 = vmatmul.mubr.msk.bf16.gmra.mrb[4].mxu1 %vm415_vm0, %v776_v9 }
 0x278   : > { %v541_v11 = vpop.f32.mrb[0].mxu1 }
 0x279   : > { %v542_v12 = vadd.f32 %v541_v11, %v481_v10  ;;  %v543_v13 = vpop.f32.mrb[1].mxu1 }
 0x27a   : > { %v544_v15 = vadd.f32 %v543_v13, %v481_v10  ;;  %v545_v16 = vpop.f32.mrb[2].mxu1 }
 0x27b   : > { %558 = vst [vmem:[%s237_s27] sm:$0xff] %v542_v12  ;;  %v546_v17 = vadd.f32 %v545_v16, %v486_v14  ;;  %v547_v18 = vpop.f32.mrb[3].mxu1 }
 0x27c   : > { %559 = vst [vmem:[%s237_s27 + $0x8] sm:$0xff] %v544_v15  ;;  %v548_v4 = vadd.f32 %v547_v18, %v486_v14 }
 0x27d   : > { %560 = vst [vmem:[%s237_s27 + $0x10] sm:$0xff] %v546_v17 }
 0x27e   : > { %561 = vst [vmem:[%s237_s27 + $0x18] sm:$0xff] %v548_v4  ;;  %570 = sbr.rel (!%p918_p5) target bundleno = 653 (0x28d), region = 44 }
 0x280   : > { %v551_v20 = vpop.f32.mrb[4].mxu1 }
 0x281   : > { %v552_v21 = vadd.f32 %v551_v20, %v491_v19  ;;  %v553_v22 = vpop.f32.mrb[5].mxu1 }
 0x282   : > { %v554_v23 = vadd.f32 %v553_v22, %v491_v19  ;;  %v555_v24 = vpop.f32.mrb[6].mxu1  ;;  %v588_v26 = vld [vmem:[%s237_s27] sm:$0xff] (%p918_p5) }
 0x283   : > { %562 = vst [vmem:[%s237_s27 + $0x20] sm:$0xff] %v552_v21  ;;  %v556_v25 = vpop.f32.mrb[7].mxu1  ;;  %v590_v27 = vld [vmem:[%s237_s27 + $0x8] sm:$0xff] (%p918_p5)  ;;  %589 = vst [vmem:[%s575_s10] sm:$0xff] (%p918_p5), %v588_v26 }
 0x284   : > { %563 = vst [vmem:[%s237_s27 + $0x28] sm:$0xff] %v554_v23  ;;  %v592_v28 = vld [vmem:[%s237_s27 + $0x10] sm:$0xff] (%p918_p5)  ;;  %591 = vst [vmem:[%s575_s10 + $0x8] sm:$0xff] (%p918_p5), %v590_v27 }
 0x285   : > { %v594_v29 = vld [vmem:[%s237_s27 + $0x18] sm:$0xff]  ;;  %593 = vst [vmem:[%s575_s10 + $0x20] sm:$0xff] %v592_v28 }
 0x286   : > { %595 = vst [vmem:[%s575_s10 + $0x28] sm:$0xff] %v594_v29 }
 0x28a   : > { %v596_v30 = vld [vmem:[%s237_s27 + $0x20] sm:$0xff] }
 0x28b   : > { %v598_v31 = vld [vmem:[%s237_s27 + $0x28] sm:$0xff]  ;;  %597 = vst [vmem:[%s575_s10 + $0x40] sm:$0xff] %v596_v30 }
 0x28c   : > { %599 = vst [vmem:[%s575_s10 + $0x48] sm:$0xff] %v598_v31 }
 0x28d PF: > { %s15_s24 = sadd.s32 1, %s831_s24   ;;  %s1008_s18 = smov %s811_s19 }
 0x28e   : > { %p12_p11 = scmp.ge.s32.totalorder %s15_s24, 6   ;;  %s1009_s19 = smov %s929_s8 }
 0x28f   : > { %s1010_s20 = smov %s823_s22  ;;  %s1011_s21 = smov %s827_s23 }
 0x290   : > { %s1012_s22 = smov %s1015_s25  ;;  %s1013_s23 = smov %s1019_s26 }
 0x291   :  { %14 = sbr.rel (!%p12_p11) target bundleno = 4 (0x4), region = 93 }

</bundles_post_ra>
